<compile_context>
chip_gen: v6e
topology: v6e:2x2x1
jax: 0.10.0
libtpu: 0.0.40
codegen_flags: <defaults>
</compile_context>

<pallas_src>
import jax
import jax.numpy as jnp
from jax.experimental import pallas as pl
from jax.experimental.pallas import tpu as pltpu

_MIB = 1024 * 1024


# --------------------------------------------------------------------------- #
# Kernels
# --------------------------------------------------------------------------- #
def _softplus_clamp_f32(x):
    # PyTorch F.softplus semantics (beta=1, threshold=20):
    #   softplus(x) = x              if x > 20
    #               = log1p(exp(x))  otherwise
    # jnp.minimum guard keeps exp() from overflowing on the untaken branch.
    sp = jnp.where(x > 20.0, x, jnp.log1p(jnp.exp(jnp.minimum(x, 20.0))))
    return jnp.clip(sp, 0.0001, 10000.0)


def _dispact_kernel(x_ref, o_ref):
    x = x_ref[...].astype(jnp.float32)   # f32 compute; hidden under HBM DMA
    o_ref[...] = _softplus_clamp_f32(x).astype(o_ref.dtype)


def _linear_dispact_kernel(x_ref, w_ref, b_ref, o_ref):
    # Producer fusion: matmul (MXU) + bias + DispAct epilogue in one pass, so
    # the pre-activation tensor never makes a standalone HBM round trip.
    acc = jnp.dot(x_ref[...], w_ref[...], preferred_element_type=jnp.float32)
    acc = acc + b_ref[...].astype(jnp.float32)
    o_ref[...] = _softplus_clamp_f32(acc).astype(o_ref.dtype)


# --------------------------------------------------------------------------- #
# Tiling helpers
# --------------------------------------------------------------------------- #
def _block_budget(target_block_bytes=None):
    """Per-generation block size + scoped-VMEM limit (review items 1 & 2)."""
    try:
        vmem_cap = int(pltpu.get_tpu_info().vmem_capacity_bytes)
    except Exception:
        vmem_cap = 64 * _MIB  # be conservative (v7x has 64 MiB per TC)
    if target_block_bytes is None:
        # v5e/v6e (128 MiB VMEM): 16 MiB blocks.  v7x (64 MiB): cap at 8 MiB.
        target_block_bytes = 16 * _MIB if vmem_cap >= 96 * _MIB else 8 * _MIB
    # in+out x double-buffer = 4x block, plus headroom for internal scratch.
    vmem_limit = min(4 * target_block_bytes + 8 * _MIB,
                     max(vmem_cap - 8 * _MIB, 16 * _MIB))
    return target_block_bytes, vmem_limit


def _plan_rows(n_rows, bytes_per_row, target_bytes, min_bytes, want_balanced):
    """Pick a row tile (multiple of 8, or full extent) targeting ~target_bytes
    per block, keeping blocks >= ~min_bytes, and preferring an even number of
    >=2 grid steps so both v7x TensorCores get balanced work."""
    total = n_rows * bytes_per_row
    steps = max(1, -(-total // target_bytes))
    max_steps = max(1, total // min_bytes)
    steps = min(steps, max_steps)
    if want_balanced and max_steps >= 2:
        if steps < 2:
            steps = 2
        elif steps % 2:
            steps = min(steps + 1, max_steps)
    tr = -(-n_rows // steps)
    tr = ((tr + 7) // 8) * 8            # (8,128) rule on the sublane dim
    if tr >= n_rows:
        tr = n_rows                      # full extent is always legal
    return tr


# --------------------------------------------------------------------------- #
# Standalone DispAct
# --------------------------------------------------------------------------- #
def disp_act(x: jax.Array, *, target_block_bytes: int | None = None,
             min_block_bytes: int = 1 * _MIB) -> jax.Array:
    """clamp(softplus(x), 1e-4, 1e4) elementwise via a Pallas TPU kernel."""
    orig_shape = x.shape
    orig_dtype = x.dtype
    total = int(x.size)
    if total == 0:
        return x  # degenerate (0, lane) block would fail Mosaic lowering

    itemsize = jnp.dtype(orig_dtype).itemsize
    target_bytes, vmem_limit = _block_budget(target_block_bytes)

    # Fast path: widest lane-dense last dim (multiple of 128) dividing the flat
    # size -> metadata-only reshape, no HBM copy, unmasked wide `vst`.
    lane = None
    for cand in (1024, 512, 256, 128):
        if total % cand == 0:
            lane = cand
            break

    if lane is not None:
        n_rows, n_cols = total // lane, lane
    else:
        # Ragged path: collapse leading dims only (still metadata-only).  The
        # partial edge block is masked by Pallas — no pad/slice HBM copies.
        n_cols = orig_shape[-1] if x.ndim >= 1 else 1
        n_rows = total // n_cols
    x2d = jnp.reshape(x, (n_rows, n_cols))

    # Lane (last-dim) tile: full width unless even an 8-row stripe of the full
    # width would blow the block budget, in which case tile lanes at 1024.
    if n_cols <= 1024 or n_cols * itemsize * 8 <= target_bytes:
        tl = n_cols
    else:
        tl = 1024
    g_cols = -(-n_cols // tl)

    tr = _plan_rows(n_rows, tl * itemsize, target_bytes, min_block_bytes,
                    want_balanced=(g_cols == 1))
    g_rows = -(-n_rows // tr)

    out2d = pl.pallas_call(
        _dispact_kernel,
        out_shape=jax.ShapeDtypeStruct((n_rows, n_cols), orig_dtype),
        grid=(g_rows, g_cols),
        in_specs=[pl.BlockSpec((tr, tl), lambda i, j: (i, j))],
        out_specs=pl.BlockSpec((tr, tl), lambda i, j: (i, j)),
        compiler_params=pltpu.CompilerParams(
            dimension_semantics=("parallel", "parallel"),
            # Let XLA fold the producing elementwise chain into the input DMA.
            allow_input_fusion=[True],
            vmem_limit_bytes=vmem_limit,
        ),
    )(x2d)

    return jnp.reshape(out2d, orig_shape)


# --------------------------------------------------------------------------- #
# Producer-fused DispAct: y = DispAct(x @ w + b)
# (epilogue of the `_dec_disp` output projection; KANLinear's spline branch is
#  not reproduced here — see TODO at top.)
# --------------------------------------------------------------------------- #
def linear_disp_act(x: jax.Array, w: jax.Array, b: jax.Array,
                    *, tm: int = 256, tn: int = 512) -> jax.Array:
    M, K = x.shape
    Kw, N = w.shape
    assert K == Kw and b.shape == (N,)
    tm = M if M <= tm else tm            # full extent or multiple of 8
    tn = N if N <= tn else tn            # full extent or multiple of 128
    b2 = jnp.reshape(b, (1, N))
    grid = (-(-M // tm), -(-N // tn))

    return pl.pallas_call(
        _linear_dispact_kernel,
        out_shape=jax.ShapeDtypeStruct((M, N), x.dtype),
        grid=grid,
        in_specs=[pl.BlockSpec((tm, K), lambda i, j: (i, 0)),
                  pl.BlockSpec((K, tn), lambda i, j: (0, j)),
                  pl.BlockSpec((1, tn), lambda i, j: (0, j))],
        out_specs=pl.BlockSpec((tm, tn), lambda i, j: (i, j)),
        compiler_params=pltpu.CompilerParams(
            dimension_semantics=("parallel", "parallel"),
        ),
    )(x, w, b2)


# --------------------------------------------------------------------------- #
# Pure-JAX references
# --------------------------------------------------------------------------- #
def disp_act_ref(x: jax.Array) -> jax.Array:
    xf = x.astype(jnp.float32)
    return _softplus_clamp_f32(xf).astype(x.dtype)


if __name__ == "__main__":
    key = jax.random.PRNGKey(0)
    k1, k2, k3, k4, k5, k6 = jax.random.split(key, 6)

    # 1) NCHW-style input: 2*4*16*16 = 2048 elems -> fast lane-dense path.
    x1 = jax.random.normal(k1, (2, 4, 16, 16), dtype=jnp.float32) * 5.0
    y1 = jax.block_until_ready(disp_act(x1))
    assert y1.shape == x1.shape and y1.dtype == x1.dtype
    assert jnp.allclose(y1, disp_act_ref(x1), atol=1e-5, rtol=1e-5)

    # 2) Ragged decoder-style input (3, 37): no pad/slice copies, Pallas masks
    #    the partial edge block.
    x2 = jax.random.normal(k2, (3, 37), dtype=jnp.float32) * 5.0
    y2 = jax.block_until_ready(disp_act(x2))
    assert y2.shape == x2.shape and y2.dtype == x2.dtype
    assert jnp.allclose(y2, disp_act_ref(x2), atol=1e-5, rtol=1e-5)

    # 3) bf16 stays bf16 in HBM; compute in f32 inside the kernel.
    x3 = (jax.random.normal(k3, (8, 32), dtype=jnp.float32) * 5.0).astype(jnp.bfloat16)
    y3 = jax.block_until_ready(disp_act(x3))
    assert y3.shape == x3.shape and y3.dtype == jnp.bfloat16
    assert jnp.allclose(y3.astype(jnp.float32),
                        disp_act_ref(x3).astype(jnp.float32),
                        atol=3e-2, rtol=3e-2)

    # 4) Multi-step grid: small target block forces >=2 even grid steps
    #    (megacore-balanced path).
    x4 = jax.random.normal(k4, (512, 1024), dtype=jnp.float32)
    y4 = jax.block_until_ready(disp_act(x4, target_block_bytes=1 * _MIB))
    assert jnp.allclose(y4, disp_act_ref(x4), atol=1e-5, rtol=1e-5)

    # 5) Empty-input guard (would otherwise fail lowering).
    x5 = jnp.zeros((0, 16), dtype=jnp.float32)
    y5 = jax.block_until_ready(disp_act(x5))
    assert y5.shape == (0, 16) and y5.dtype == jnp.float32

    # 6) Producer-fused path: DispAct as epilogue of the `_dec_disp` linear
    #    projection (batch=8, layer1=32 -> in_shape+n_meta=37).
    xb = jax.random.normal(k5, (8, 32), dtype=jnp.float32)
    wd = jax.random.normal(k6, (32, 37), dtype=jnp.float32) * 0.3
    bd = jnp.zeros((37,), dtype=jnp.float32)
    y6 = jax.block_until_ready(linear_disp_act(xb, wd, bd))
    ref6 = disp_act_ref(xb @ wd + bd)
    assert y6.shape == (8, 37) and jnp.allclose(y6, ref6, atol=1e-4, rtol=1e-4)

    print("KERNEL_OK")
</pallas_src>

<mosaic_0001>
module attributes {stable_mosaic.version = 11 : i64} {
  func.func @_dispact_kernel(%arg0: i32, %arg1: i32, %arg2: memref<2x1024xf32, #tpu.memory_space<vmem>>, %arg3: memref<2x1024xf32, #tpu.memory_space<vmem>>) attributes {dimension_semantics = [#tpu.dimension_semantics<parallel>, #tpu.dimension_semantics<parallel>], iteration_bounds = array<i64: 1, 1>, scalar_prefetch = 0 : i64, scratch_operands = 0 : i64, tpu.core_type = #tpu.core_type<tc>, window_params = [{transform_indices = @transform_0, window_bounds = array<i64: 2, 1024>}, {transform_indices = @transform_1, window_bounds = array<i64: 2, 1024>}]} {
    %c0 = arith.constant 0 : index
    %c0_0 = arith.constant 0 : index
    %0 = vector.load %arg2[%c0, %c0_0] : memref<2x1024xf32, #tpu.memory_space<vmem>>, vector<2x1024xf32>
    %cst = arith.constant 2.000000e+01 : f32
    %1 = vector.broadcast %cst : f32 to vector<2x1024xf32>
    %2 = arith.cmpf ogt, %0, %1 : vector<2x1024xf32>
    %cst_1 = arith.constant 2.000000e+01 : f32
    %3 = vector.broadcast %cst_1 : f32 to vector<2x1024xf32>
    %4 = arith.minimumf %0, %3 : vector<2x1024xf32>
    %5 = math.exp %4 : vector<2x1024xf32>
    %6 = math.log1p %5 : vector<2x1024xf32>
    %7 = arith.select %2, %0, %6 : vector<2x1024xi1>, vector<2x1024xf32>
    %cst_2 = arith.constant 9.99999974E-5 : f32
    %cst_3 = arith.constant 1.000000e+04 : f32
    %8 = vector.broadcast %cst_2 : f32 to vector<2x1024xf32>
    %9 = arith.maximumf %8, %7 : vector<2x1024xf32>
    %10 = vector.broadcast %cst_3 : f32 to vector<2x1024xf32>
    %11 = arith.minimumf %10, %9 : vector<2x1024xf32>
    %c0_4 = arith.constant 0 : index
    %c0_5 = arith.constant 0 : index
    %12 = vector.load %arg3[%c0_4, %c0_5] : memref<2x1024xf32, #tpu.memory_space<vmem>>, vector<2x1024xf32>
    tpu.vector_store %arg3[%c0_4, %c0_5], %11 {strides = array<i32>} : memref<2x1024xf32, #tpu.memory_space<vmem>>, vector<2x1024xf32>,
    return
  }
  func.func @transform_0(%arg0: i32, %arg1: i32) -> (i32, i32) {
    %c0_i32 = arith.constant 0 : i32
    return %arg0, %arg1 : i32, i32
  }
  func.func @transform_1(%arg0: i32, %arg1: i32) -> (i32, i32) {
    %c0_i32 = arith.constant 0 : i32
    return %arg0, %arg1 : i32, i32
  }
}

</mosaic_0001>

<bundles_post_ra>
// kernel: tpu_custom_call.1
= control target key start
LH: loop header
LB: loop body
LE: loop exit
PB: predicated region body
PF: predicated region fallthrough
CT: control target
= control target key end

     0   :  { %6 = vsyncpa [#allocation3], 0  ;;  %s144_s0 = inlined_call_operand.hbm [shape: f32[2,1024], index: 0, kind: input, shape index: {}]   ;;  %s145_s1 = inlined_call_operand.hbm [shape: f32[2,1024], index: 1, kind: output, shape index: {}]  }
   0x1   :  { %7 = vsyncpa [#allocation4], 0  ;;  %s126_s6 = smov [#allocation2]  }
   0x2   :  { %s14_s7 = sshll.u32 %s126_s6, 4  ;;  %s15_s7 = int_to_ptr.vmem [resolvable:$true] %s14_s7 }
   0x3   :  { %s90_s8 = scalar_lea.vmem %s15_s7, 256  ;;  %p95_p1 = scmp.lt.s32.totalorder %s15_s7, %s15_s7 }
   0x4   :  { %p91_p0 = scmp.ne.s32.totalorder %s15_s7, %s90_s8  ;;  %p96_p2 = scmp.lt.s32.totalorder %s90_s8, %s90_s8 }
   0x6   :  { %p97_p3 = por %p96_p2, %p95_p1 }
   0x8   :  { %p98_p4 = pnand %p97_p3, %p91_p0 }
   0xa   :  { %101 = shalt.err (!%p98_p4)
}
   0xb   :  { %17 = dma.hbm_to_vmem [thread:$0]  %s144_s0, 256, %s15_s7, [#allocation3]  }
   0xc   :  { %122 = dma.done.wait [#allocation3], 256  }
   0xd   :  { %123 = vsyncadd [#allocation3], 4294967040  ;;  %v21_v0 = vld [vmem:[#allocation2] sm:$0xff]  ;;  %v22_v1 = vld [vmem:[#allocation2 + $0x8] sm:$0xff]  ;;  %s127_s0 = smov [#allocation5]  }
   0xe   :  { %v25_v2 = vmin.f32 %v21_v0, 20.0  ;;  %v26_v3 = vmin.f32 %v22_v1, 20.0  ;;  %vm23_vm1 = vcmp.gt.f32.partialorder %v21_v0, 20.0  ;;  %vm24_vm3 = vcmp.gt.f32.partialorder %v22_v1, 20.0  ;;  %s63_s11 = sshll.u32 %s127_s0, 4  ;;  %s64_s11 = int_to_ptr.vmem [resolvable:$true] %s63_s11 }
   0xf   :  { %s102_s12 = scalar_lea.vmem %s64_s11, 256  ;;  %p107_p6 = scmp.lt.s32.totalorder %s64_s11, %s64_s11 }
  0x10   :  { %v27_v4 = vmul.f32 1.442695, %v25_v2  ;;  %v29_v5 = vmul.f32 1.442695, %v26_v3  ;;  %p103_p5 = scmp.ne.s32.totalorder %s64_s11, %s102_s12  ;;  %p108_p7 = scmp.lt.s32.totalorder %s102_s12, %s102_s12 }
  0x12   :  { %74 = vpow2.f32 %v27_v4  ;;  %p109_p8 = por %p108_p7, %p107_p6 }
  0x13   :  { %76 = vpow2.f32 %v29_v5 }
  0x14   :  { %p110_p9 = pnand %p109_p8, %p103_p5 }
  0x1f   :  { %v75_v6 = vpop.eup %74 }
  0x20   :  { %v77_v7 = vpop.eup %76  ;;  %v31_v8 = vadd.f32 1.0, %v75_v6  ;;  %v34_v10 = vmul.f32 -0.5, %v75_v6  ;;  %v37_v13 = vand.u32 2147483647, %v75_v6 }
  0x21   :  { %v40_v9 = vadd.f32 1.0, %v77_v7  ;;  %v43_v11 = vmul.f32 -0.5, %v77_v7  ;;  %v46_v15 = vand.u32 2147483647, %v77_v7 }
  0x22   :  { %78 = vlog2.f32 %v31_v8  ;;  %v35_v12 = vadd.f32 1.0, %v34_v10  ;;  %vm38_vm0 = vcmp.lt.f32.partialorder %v37_v13, 0.0004427343 }
  0x23   :  { %80 = vlog2.f32 %v40_v9  ;;  %v44_v14 = vadd.f32 1.0, %v43_v11  ;;  %vm47_vm2 = vcmp.lt.f32.partialorder %v46_v15, 0.0004427343 }
  0x24   :  { %v36_v16 = vmul.f32 %v75_v6, %v35_v12 }
  0x25   :  { %v45_v18 = vmul.f32 %v77_v7, %v44_v14 }
  0x2f   :  { %v79_v17 = vpop.eup %78 }
  0x30   :  { %v81_v19 = vpop.eup %80  ;;  %v33_v20 = vmul.f32 0.6931472, %v79_v17 }
  0x31   :  { %v42_v21 = vmul.f32 0.6931472, %v81_v19 }
  0x32   :  { %v39_v22 = vsel %vm38_vm0, %v36_v16, %v33_v20 }
  0x33   :  { %v49_v23 = vsel %vm23_vm1, %v21_v0, %v39_v22  ;;  %v48_v24 = vsel %vm47_vm2, %v45_v18, %v42_v21 }
  0x34   :  { %v51_v25 = vmax.f32 %v49_v23, 0.0001  ;;  %v50_v26 = vsel %vm24_vm3, %v22_v1, %v48_v24 }
  0x35   :  { %v52_v27 = vmax.f32 %v50_v26, 0.0001 }
  0x36   :  { %v53_v28 = vmin.f32 %v51_v25, 10000.0 }
  0x37   :  { %v54_v29 = vmin.f32 %v52_v27, 10000.0 }
  0x38   :  { %55 = vst [vmem:[#allocation5] sm:$0xff] %v53_v28 }
  0x39   :  { %56 = vst [vmem:[#allocation5 + $0x8] sm:$0xff] %v54_v29 }
  0x3a   :  { %113 = shalt.err (!%p110_p9)
}
  0x3b   :  { %66 = dma.vmem_to_hbm [thread:$0]  %s64_s11, 256, %s145_s1, [#allocation4]  }
  0x3c   :  { %124 = dma.done.wait [#allocation4], 256  }
  0x3d   :  { %125 = vsyncadd [#allocation4], 4294967040 }
  0x3e   :  { %70 = vsyncpa [#allocation3], 1 }
  0x3f   :  { %71 = vsyncpa [#allocation4], 1 }

</bundles_post_ra>
